<compile_context>
chip_gen: v5e
topology: v5e:2x2
jax: 0.10.0
libtpu: 0.0.40
codegen_flags: <defaults>
</compile_context>

<pallas_src>
import functools

import jax
import jax.numpy as jnp
import numpy as np
from jax.experimental import pallas as pl
from jax.experimental.pallas import tpu as pltpu


def _softplus(z):
    # Single-exp numerically stable softplus (matches torch.nn.Softplus, beta=1).
    return jnp.maximum(z, 0.0) + jnp.log1p(jnp.exp(-jnp.abs(z)))


def infonce_kernel(x_ref, y_ref, w1xt_ref, w1yt_ref, b1_ref, w2_ref, b2_ref,
                   out_ref, *, sample_size):
    n = sample_size
    inv_n = jnp.float32(1.0 / n)
    b2 = b2_ref[0, 0]                                        # SMEM scalar

    # Two small MXU pushes — no block-diagonal zero padding, no wasted MACs.
    hx = jnp.dot(x_ref[...], w1xt_ref[...],
                 preferred_element_type=jnp.float32)         # [N, H]
    hy = jnp.dot(y_ref[...], w1yt_ref[...],
                 preferred_element_type=jnp.float32)         # [N, H]

    # Fold b1 into hy once so the O(N^2*H) pairwise build is one add + one max.
    hyb = hy + b1_ref[...]                                   # [N, H]
    w2 = w2_ref[...]                                         # [1, H]

    # T0 computed directly: T0[i] = F([x_i; y_i]) (no iota mask / diag extract).
    z0 = jnp.maximum(hx + hyb, 0.0)                          # [N, H]
    t0 = _softplus(jnp.sum(z0 * w2, axis=-1, keepdims=True) + b2)   # [N, 1]

    # Pairwise scores: T1[i, j] = F([x_j; y_i]).
    z = jnp.maximum(hx[None, :, :] + hyb[:, None, :], 0.0)   # [N, N, H]
    s = jnp.sum(z * w2[None, :, :], axis=-1) + b2            # [N, N]
    t1 = _softplus(s)

    # Row-wise logsumexp over j (lane axis).
    m = jnp.max(t1, axis=-1, keepdims=True)                  # [N, 1]
    lse = m + jnp.log(jnp.sum(jnp.exp(t1 - m),
                              axis=-1, keepdims=True))       # [N, 1]

    t0_mean = jnp.sum(t0, keepdims=True) * inv_n             # [1, 1]
    lse_mean = jnp.sum(lse, keepdims=True) * inv_n           # [1, 1]
    out_ref[...] = t0_mean - (lse_mean - jnp.log(jnp.float32(n)))


@jax.jit
def infonce_forward(x, y, w1, b1, w2, b2):
    """x: [N, x_dim], y: [N, y_dim]; w1: [H, x_dim+y_dim], b1: [H],
    w2: [1, H], b2: [1].  Returns the scalar InfoNCE lower bound."""
    n, x_dim = x.shape
    ny, y_dim = y.shape
    if n != ny:
        raise ValueError("x_samples and y_samples must share the batch dimension")
    hidden = w1.shape[0]

    # Parameter-side split/transpose only (tiny, fused by XLA, and constant per
    # step in a training graph); the activation path enters the kernel raw.
    w1xt = jnp.transpose(w1[:, :x_dim]).astype(jnp.float32)   # [Dx, H]
    w1yt = jnp.transpose(w1[:, x_dim:]).astype(jnp.float32)   # [Dy, H]
    b1r = b1.reshape(1, hidden).astype(jnp.float32)           # [1, H]
    w2r = w2.reshape(1, hidden).astype(jnp.float32)           # [1, H]
    b2r = b2.reshape(1, 1).astype(jnp.float32)                # [1, 1] (SMEM)
    xf = x.astype(jnp.float32)
    yf = y.astype(jnp.float32)

    flops = (2 * n * x_dim * hidden + 2 * n * y_dim * hidden   # two MXU dots
             + 5 * n * n * hidden                              # pairwise build + contract
             + 12 * n * n + 12 * n)                            # softplus / LSE elementwise
    transcendentals = 3 * n * n + 3 * n
    bytes_accessed = 4 * (xf.size + yf.size + w1xt.size + w1yt.size
                          + b1r.size + w2r.size + b2r.size + 1)

    kernel = functools.partial(infonce_kernel, sample_size=n)
    vmem = pl.BlockSpec(memory_space=pltpu.MemorySpace.VMEM)
    smem = pl.BlockSpec(memory_space=pltpu.MemorySpace.SMEM)
    out = pl.pallas_call(
        kernel,
        out_shape=jax.ShapeDtypeStruct((1, 1), jnp.float32),
        in_specs=[vmem, vmem, vmem, vmem, vmem, vmem, smem],
        out_specs=vmem,
        cost_estimate=pl.CostEstimate(flops=flops,
                                      transcendentals=transcendentals,
                                      bytes_accessed=bytes_accessed),
    )(xf, yf, w1xt, w1yt, b1r, w2r, b2r)
    return out[0, 0]


def infonce_reference(x, y, w1, b1, w2, b2):
    """Pure-JAX reference mirroring the PyTorch forward exactly."""
    def f(inp):
        h = jnp.maximum(inp @ w1.T + b1, 0.0)
        return jax.nn.softplus(h @ w2.T + b2)

    n = x.shape[0]
    t0 = f(jnp.concatenate([x, y], axis=-1))                      # [N, 1]
    x_tile = jnp.broadcast_to(x[None, :, :], (n, n, x.shape[1]))  # x_j
    y_tile = jnp.broadcast_to(y[:, None, :], (n, n, y.shape[1]))  # y_i
    t1 = f(jnp.concatenate([x_tile, y_tile], axis=-1))            # [N, N, 1]
    lse = jax.scipy.special.logsumexp(t1, axis=1)                 # [N, 1]
    return t0.mean() - (lse.mean() - jnp.log(jnp.float32(n)))


if __name__ == "__main__":
    N, x_dim, y_dim, hidden = 8, 16, 16, 64

    key = jax.random.PRNGKey(0)
    ks = jax.random.split(key, 6)
    x = jax.random.normal(ks[0], (N, x_dim), jnp.float32)
    y = jax.random.normal(ks[1], (N, y_dim), jnp.float32)

    # Deterministic parameter init (PyTorch Linear-style uniform(-1/sqrt(in), 1/sqrt(in))).
    in_dim = x_dim + y_dim
    b1_bound = 1.0 / np.sqrt(in_dim)
    w1 = jax.random.uniform(ks[2], (hidden, in_dim), jnp.float32, -b1_bound, b1_bound)
    b1 = jax.random.uniform(ks[3], (hidden,), jnp.float32, -b1_bound, b1_bound)
    b2_bound = 1.0 / np.sqrt(hidden)
    w2 = jax.random.uniform(ks[4], (1, hidden), jnp.float32, -b2_bound, b2_bound)
    b2 = jax.random.uniform(ks[5], (1,), jnp.float32, -b2_bound, b2_bound)

    out = jax.block_until_ready(infonce_forward(x, y, w1, b1, w2, b2))
    ref = jax.block_until_ready(infonce_reference(x, y, w1, b1, w2, b2))
    assert np.allclose(np.asarray(out), np.asarray(ref), rtol=1e-5, atol=1e-5), (out, ref)
    print("KERNEL_OK")
</pallas_src>

<mosaic_0001>
module attributes {stable_mosaic.version = 11 : i64} {
  func.func @infonce_kernel(%arg0: memref<8x16xf32, #tpu.memory_space<vmem>>, %arg1: memref<8x16xf32, #tpu.memory_space<vmem>>, %arg2: memref<16x64xf32, #tpu.memory_space<vmem>>, %arg3: memref<16x64xf32, #tpu.memory_space<vmem>>, %arg4: memref<1x64xf32, #tpu.memory_space<vmem>>, %arg5: memref<1x64xf32, #tpu.memory_space<vmem>>, %arg6: memref<1x1xf32, #tpu.memory_space<smem>>, %arg7: memref<1x1xf32, #tpu.memory_space<vmem>>) attributes {dimension_semantics = [], scalar_prefetch = 0 : i64, scratch_operands = 0 : i64, tpu.core_type = #tpu.core_type<tc>} {
    %c0 = arith.constant 0 : index
    %c0_0 = arith.constant 0 : index
    %0 = memref.load %arg6[%c0, %c0_0] : memref<1x1xf32, #tpu.memory_space<smem>>
    %c0_1 = arith.constant 0 : index
    %c0_2 = arith.constant 0 : index
    %1 = vector.load %arg0[%c0_1, %c0_2] : memref<8x16xf32, #tpu.memory_space<vmem>>, vector<8x16xf32>
    %c0_3 = arith.constant 0 : index
    %c0_4 = arith.constant 0 : index
    %2 = vector.load %arg2[%c0_3, %c0_4] : memref<16x64xf32, #tpu.memory_space<vmem>>, vector<16x64xf32>
    %cst = arith.constant dense<0.000000e+00> : vector<8x64xf32>
    %3 = tpu.matmul %1, %2, %cst {dimension_numbers = #tpu.dot_dimension_numbers<[1], [0], [0], [1], [0, 0, 1, 1], [], []>} : vector<8x16xf32>, vector<16x64xf32>, vector<8x64xf32> -> vector<8x64xf32>
    %c0_5 = arith.constant 0 : index
    %c0_6 = arith.constant 0 : index
    %4 = vector.load %arg1[%c0_5, %c0_6] : memref<8x16xf32, #tpu.memory_space<vmem>>, vector<8x16xf32>
    %c0_7 = arith.constant 0 : index
    %c0_8 = arith.constant 0 : index
    %5 = vector.load %arg3[%c0_7, %c0_8] : memref<16x64xf32, #tpu.memory_space<vmem>>, vector<16x64xf32>
    %cst_9 = arith.constant dense<0.000000e+00> : vector<8x64xf32>
    %6 = tpu.matmul %4, %5, %cst_9 {dimension_numbers = #tpu.dot_dimension_numbers<[1], [0], [0], [1], [0, 0, 1, 1], [], []>} : vector<8x16xf32>, vector<16x64xf32>, vector<8x64xf32> -> vector<8x64xf32>
    %c0_10 = arith.constant 0 : index
    %c0_11 = arith.constant 0 : index
    %7 = vector.load %arg4[%c0_10, %c0_11] : memref<1x64xf32, #tpu.memory_space<vmem>>, vector<1x64xf32>
    %8 = vector.broadcast %7 : vector<1x64xf32> to vector<8x64xf32>
    %9 = arith.addf %6, %8 : vector<8x64xf32>
    %c0_12 = arith.constant 0 : index
    %c0_13 = arith.constant 0 : index
    %10 = vector.load %arg5[%c0_12, %c0_13] : memref<1x64xf32, #tpu.memory_space<vmem>>, vector<1x64xf32>
    %11 = arith.addf %3, %9 : vector<8x64xf32>
    %cst_14 = arith.constant 0.000000e+00 : f32
    %12 = vector.broadcast %cst_14 : f32 to vector<8x64xf32>
    %13 = arith.maximumf %11, %12 : vector<8x64xf32>
    %14 = vector.broadcast %10 : vector<1x64xf32> to vector<8x64xf32>
    %15 = arith.mulf %13, %14 : vector<8x64xf32>
    %cst_15 = arith.constant dense<0.000000e+00> : vector<8xf32>
    %16 = vector.multi_reduction <add>, %15, %cst_15 [1] : vector<8x64xf32> to vector<8xf32>
    %17 = vector.shape_cast %16 : vector<8xf32> to vector<8x1xf32>
    %18 = vector.broadcast %0 : f32 to vector<8x1xf32>
    %19 = arith.addf %17, %18 : vector<8x1xf32>
    %cst_16 = arith.constant 0.000000e+00 : f32
    %20 = vector.broadcast %cst_16 : f32 to vector<8x1xf32>
    %21 = arith.maximumf %19, %20 : vector<8x1xf32>
    %22 = math.absf %19 : vector<8x1xf32>
    %cst_17 = arith.constant 0.000000e+00 : f32
    %23 = vector.broadcast %cst_17 : f32 to vector<8x1xf32>
    %24 = arith.subf %23, %22 : vector<8x1xf32>
    %25 = math.exp %24 : vector<8x1xf32>
    %26 = math.log1p %25 : vector<8x1xf32>
    %27 = arith.addf %21, %26 : vector<8x1xf32>
    %28 = vector.shape_cast %3 : vector<8x64xf32> to vector<1x8x64xf32>
    %29 = vector.shape_cast %9 : vector<8x64xf32> to vector<8x1x64xf32>
    %30 = vector.broadcast %28 : vector<1x8x64xf32> to vector<8x8x64xf32>
    %31 = vector.broadcast %29 : vector<8x1x64xf32> to vector<8x8x64xf32>
    %32 = arith.addf %30, %31 : vector<8x8x64xf32>
    %cst_18 = arith.constant 0.000000e+00 : f32
    %33 = vector.broadcast %cst_18 : f32 to vector<8x8x64xf32>
    %34 = arith.maximumf %32, %33 : vector<8x8x64xf32>
    %35 = vector.shape_cast %10 : vector<1x64xf32> to vector<1x1x64xf32>
    %36 = vector.broadcast %35 : vector<1x1x64xf32> to vector<8x8x64xf32>
    %37 = arith.mulf %34, %36 : vector<8x8x64xf32>
    %cst_19 = arith.constant dense<0.000000e+00> : vector<8x8xf32>
    %38 = vector.multi_reduction <add>, %37, %cst_19 [2] : vector<8x8x64xf32> to vector<8x8xf32>
    %39 = vector.broadcast %0 : f32 to vector<8x8xf32>
    %40 = arith.addf %38, %39 : vector<8x8xf32>
    %cst_20 = arith.constant 0.000000e+00 : f32
    %41 = vector.broadcast %cst_20 : f32 to vector<8x8xf32>
    %42 = arith.maximumf %40, %41 : vector<8x8xf32>
    %43 = math.absf %40 : vector<8x8xf32>
    %cst_21 = arith.constant 0.000000e+00 : f32
    %44 = vector.broadcast %cst_21 : f32 to vector<8x8xf32>
    %45 = arith.subf %44, %43 : vector<8x8xf32>
    %46 = math.exp %45 : vector<8x8xf32>
    %47 = math.log1p %46 : vector<8x8xf32>
    %48 = arith.addf %42, %47 : vector<8x8xf32>
    %cst_22 = arith.constant dense<0xFF800000> : vector<8xf32>
    %49 = vector.multi_reduction <maximumf>, %48, %cst_22 [1] : vector<8x8xf32> to vector<8xf32>
    %50 = vector.shape_cast %49 : vector<8xf32> to vector<8x1xf32>
    %51 = vector.broadcast %50 : vector<8x1xf32> to vector<8x8xf32>
    %52 = arith.subf %48, %51 : vector<8x8xf32>
    %53 = math.exp %52 : vector<8x8xf32>
    %cst_23 = arith.constant dense<0.000000e+00> : vector<8xf32>
    %54 = vector.multi_reduction <add>, %53, %cst_23 [1] : vector<8x8xf32> to vector<8xf32>
    %55 = vector.shape_cast %54 : vector<8xf32> to vector<8x1xf32>
    %56 = math.log %55 : vector<8x1xf32>
    %57 = arith.addf %50, %56 : vector<8x1xf32>
    %58 = vector.shape_cast %27 : vector<8x1xf32> to vector<1x8x1xf32>
    %cst_24 = arith.constant dense<0.000000e+00> : vector<1xf32>
    %59 = vector.multi_reduction <add>, %58, %cst_24 [1, 2] : vector<1x8x1xf32> to vector<1xf32>
    %60 = vector.shape_cast %59 : vector<1xf32> to vector<1x1x1xf32>
    %61 = vector.extract %60[0, 0, 0] : f32 from vector<1x1x1xf32>
    %62 = vector.broadcast %61 : f32 to vector<1x1xf32>
    %cst_25 = arith.constant 1.250000e-01 : f32
    %63 = vector.broadcast %cst_25 : f32 to vector<1x1xf32>
    %64 = arith.mulf %62, %63 : vector<1x1xf32>
    %65 = vector.shape_cast %57 : vector<8x1xf32> to vector<1x8x1xf32>
    %cst_26 = arith.constant dense<0.000000e+00> : vector<1xf32>
    %66 = vector.multi_reduction <add>, %65, %cst_26 [1, 2] : vector<1x8x1xf32> to vector<1xf32>
    %67 = vector.shape_cast %66 : vector<1xf32> to vector<1x1x1xf32>
    %68 = vector.extract %67[0, 0, 0] : f32 from vector<1x1x1xf32>
    %69 = vector.broadcast %68 : f32 to vector<1x1xf32>
    %cst_27 = arith.constant 1.250000e-01 : f32
    %70 = vector.broadcast %cst_27 : f32 to vector<1x1xf32>
    %71 = arith.mulf %69, %70 : vector<1x1xf32>
    %cst_28 = arith.constant 8.000000e+00 : f32
    %72 = math.log %cst_28 : f32
    %73 = vector.broadcast %72 : f32 to vector<1x1xf32>
    %74 = arith.subf %71, %73 : vector<1x1xf32>
    %75 = arith.subf %64, %74 : vector<1x1xf32>
    %c0_29 = arith.constant 0 : index
    %c0_30 = arith.constant 0 : index
    %76 = vector.load %arg7[%c0_29, %c0_30] : memref<1x1xf32, #tpu.memory_space<vmem>>, vector<1x1xf32>
    tpu.vector_store %arg7[%c0_29, %c0_30], %75 {strides = array<i32>} : memref<1x1xf32, #tpu.memory_space<vmem>>, vector<1x1xf32>,
    return
  }
}

</mosaic_0001>

<bundles_post_ra>
// kernel: infonce_forward.1
= control target key start
LH: loop header
LB: loop body
LE: loop exit
PB: predicated region body
PF: predicated region fallthrough
CT: control target
= control target key end

     0   :  { %vm32_vm0 = vcmask 130048   ;;  %s807_s0 = inlined_call_operand.vmem [shape: f32[8,16], index: 0, kind: input, shape index: {}]   ;;  %s808_s1 = inlined_call_operand.vmem [shape: f32[8,16], index: 1, kind: input, shape index: {}]   ;;  %s809_s2 = inlined_call_operand.vmem [shape: f32[16,64], index: 2, kind: input, shape index: {}]   ;;  %s810_s3 = inlined_call_operand.vmem [shape: f32[16,64], index: 3, kind: input, shape index: {}]   ;;  %s811_s4 = inlined_call_operand.vmem [shape: f32[1,64], index: 4, kind: input, shape index: {}]   ;;  %s812_s5 = inlined_call_operand.vmem [shape: f32[1,64], index: 5, kind: input, shape index: {}]   ;;  %s813_s6 = inlined_call_operand.<no memory space> [shape: f32[1,1], index: 6, kind: input, shape index: {}]   ;;  %s814_s7 = inlined_call_operand.hbm [shape: f32[1,1], index: 7, kind: output, shape index: {}]  }
   0x1   :  { %v58_v0 = vld [vmem:[%s810_s3 + $0x8] sm:$0xff]  ;;  %v57_v2 = vld [vmem:[%s810_s3] sm:$0xff] }
   0x2   :  { %v31_v1 = vld [vmem:[%s809_s2 + $0x8] sm:$0xff]  ;;  %80 = vmatpush.msra.mxu1 %v58_v0  ;;  %v56_v3 = vld [vmem:[%s808_s1] sm:$0xff] }
   0x3   :  { %50 = vmatpush.msra.mxu0 %v31_v1  ;;  %v30_v4 = vld [vmem:[%s809_s2] sm:$0xff] }
   0x4   :  { %v29_v5 = vld [vmem:[%s807_s0] sm:$0xff]  ;;  %81 = vmatpush.msra.mxu1 %v57_v2 }
   0x5   :  { %51 = vmatpush.msra.mxu0 %v30_v4 }
   0x6   :  { %13 = vsyncpa [#allocation4], 0  ;;  %492 = vmatmul.msk.f32.vlgmr.msra.gmra.mxu1 %vm32_vm0, %v56_v3  ;;  %491 = vmatmul.msk.f32.vlgmr.msra.gmra.mxu0 %vm32_vm0, %v29_v5  ;;  %v503_v6 = vld [vmem:[%s811_s4] ss:$0 sm:$0xff]  ;;  %vm93_vm1 = vcmask 523264   ;;  %v665_v62 = vstv %s813_s6  ;;  %vm332_vm3 = vcmask 1041409  }
   0x7   :  { %v504_v23 = vld [vmem:[%s812_s5] ss:$0 sm:$0xff]  ;;  %vm334_vm7 = vcmask 1042434   ;;  %vm336_vm9 = vcmask 1043459   ;;  %vm338_vm12 = vcmask 1044484   ;;  %vm340_vm13 = vcmask 1045509  }
   0x8   :  { %vm342_vm15 = vcmask 1046534   ;;  %vm344_vm0 = vcmask 1047559   ;;  %s586_s14 = smov [#allocation3]   ;;  %s482_s18 = sshll.u32 %s814_s7, 4  ;;  %s483_s18 = int_to_ptr.hbm [resolvable:$true] %s482_s18 }
   0x9   :  { %s480_s15 = sshll.u32 %s586_s14, 4  ;;  %s481_s15 = int_to_ptr.vmem [resolvable:$true] %s480_s15 }
  0x83   :  { %v83_v7 = vpop.f32.mrf.mxu1  ;;  %v53_v13 = vpop.f32.mrf.mxu0 }
  0x84   :  { %v84_v8 = vadd.f32 %v503_v6, %v83_v7 }
  0x86   :  { %v122_v9 = vperm.slane %v84_v8, 0  ;;  %v118_v10 = vrot.slane %v84_v8, 4  ;;  %v116_v11 = vrot.slane %v84_v8, 2  ;;  %v115_v12 = vrot.slane %v84_v8, 1 }
  0x87   :  { %v119_v14 = vrot.slane %v84_v8, 5  ;;  %v117_v15 = vrot.slane %v84_v8, 3  ;;  %v120_v22 = vrot.slane %v84_v8, 6  ;;  %v121_v29 = vrot.slane %v84_v8, 7 }
  0x88   :  { %v138_v16 = vadd.f32 %v122_v9, %v53_v13  ;;  %v126_v17 = vperm.slane %v118_v10, 0  ;;  %v124_v18 = vperm.slane %v116_v11, 0  ;;  %v123_v19 = vperm.slane %v115_v12, 0 }
  0x89   :  { %v127_v20 = vperm.slane %v119_v14, 0  ;;  %v125_v21 = vperm.slane %v117_v15, 0  ;;  %v128_v34 = vperm.slane %v120_v22, 0  ;;  %v129_v40 = vperm.slane %v121_v29, 0 }
  0x8a   :  { %v146_v24 = vmax.f32 %v138_v16, 0.0  ;;  %v142_v25 = vadd.f32 %v126_v17, %v53_v13  ;;  %v140_v26 = vadd.f32 %v124_v18, %v53_v13  ;;  %v139_v27 = vadd.f32 %v123_v19, %v53_v13 }
  0x8b   :  { %v143_v28 = vadd.f32 %v127_v20, %v53_v13  ;;  %v141_v33 = vadd.f32 %v125_v21, %v53_v13  ;;  %v87_v44 = vadd.f32 %v84_v8, %v53_v13  ;;  %v144_v46 = vadd.f32 %v128_v34, %v53_v13 }
  0x8c   :  { %v154_v30 = vmul.f32 %v504_v23, %v146_v24  ;;  %v150_v31 = vmax.f32 %v142_v25, 0.0  ;;  %v148_v32 = vmax.f32 %v140_v26, 0.0  ;;  %v147_v38 = vmax.f32 %v139_v27, 0.0 }
  0x8d   :  { %v151_v39 = vmax.f32 %v143_v28, 0.0  ;;  %v149_v43 = vmax.f32 %v141_v33, 0.0  ;;  %v88_v47 = vmax.f32 %v87_v44, 0.0  ;;  %v145_v50 = vadd.f32 %v129_v40, %v53_v13 }
  0x8e   :  { %v162_v35 = vsel %vm93_vm1, %v154_v30, 0.0  ;;  %v158_v36 = vmul.f32 %v504_v23, %v150_v31  ;;  %v156_v37 = vmul.f32 %v504_v23, %v148_v32  ;;  %v155_v45 = vmul.f32 %v504_v23, %v147_v38 }
  0x8f   :  { %163 = vadd.xlane.f32.xlu0 %v162_v35  ;;  %v159_v48 = vmul.f32 %v504_v23, %v151_v39  ;;  %v157_v49 = vmul.f32 %v504_v23, %v149_v43  ;;  %v92_v51 = vmul.f32 %v504_v23, %v88_v47  ;;  %v152_v53 = vmax.f32 %v144_v46, 0.0 }
  0x90   :  { %v174_v41 = vsel %vm93_vm1, %v158_v36, 0.0  ;;  %v168_v42 = vsel %vm93_vm1, %v156_v37, 0.0  ;;  %v165_v52 = vsel %vm93_vm1, %v155_v45, 0.0  ;;  %v153_v57 = vmax.f32 %v145_v50, 0.0 }
  0x91   :  { %175 = vadd.xlane.f32.xlu2 %v174_v41  ;;  %169 = vadd.xlane.f32.xlu1 %v168_v42  ;;  %v656_v54 = vsel %vm93_vm1, %v92_v51, 0.0  ;;  %v177_v55 = vsel %vm93_vm1, %v159_v48, 0.0  ;;  %v171_v56 = vsel %vm93_vm1, %v157_v49, 0.0  ;;  %v160_v58 = vmul.f32 %v504_v23, %v152_v53 }
  0x92   :  { %v161_v59 = vmul.f32 %v504_v23, %v153_v57  ;;  %v322_v37 = vlaneseq }
  0x93   :  { %v180_v60 = vsel %vm93_vm1, %v160_v58, 0.0 }
  0x94   :  { %v183_v61 = vsel %vm93_vm1, %v161_v59, 0.0  ;;  %v702_v51 = vand.u32 127, %v322_v37  ;;  %vm347_vm1 = vcmask 64512  }
  0x97   :  { %166 = vadd.xlane.f32.xlu0 %v165_v52 }
  0x99   :  { %178 = vadd.xlane.f32.xlu2 %v177_v55  ;;  %172 = vadd.xlane.f32.xlu1 %v171_v56 }
  0x9f   :  { %181 = vadd.xlane.f32.xlu0 %v180_v60 }
  0xa1   :  { %184 = vadd.xlane.f32.xlu1 %v183_v61 }
 0x102   :  { %v164_v63 = vpop.xlane.xlu0 %163 }
 0x103   :  { %v668_v0 = vadd.f32 %v164_v63, %v665_v62 }
 0x104   :  { %v176_v1 = vpop.xlane.xlu2 %175  ;;  %v170_v2 = vpop.xlane.xlu1 %169 }
 0x105   :  { %v202_v3 = vand.u32 2147483647, %v668_v0  ;;  %v672_v4 = vadd.f32 %v176_v1, %v665_v62  ;;  %v675_v5 = vadd.f32 %v170_v2, %v665_v62  ;;  %v194_v56 = vmax.f32 %v668_v0, 0.0 }
 0x107   :  { %v210_v6 = vsub.f32 0.0, %v202_v3  ;;  %v206_v7 = vand.u32 2147483647, %v672_v4  ;;  %v204_v8 = vand.u32 2147483647, %v675_v5 }
 0x109   :  { %v218_v9 = vmul.f32 1.442695, %v210_v6  ;;  %v214_v10 = vsub.f32 0.0, %v206_v7  ;;  %v212_v11 = vsub.f32 0.0, %v204_v8 }
 0x10a   :  { %v167_v12 = vpop.xlane.xlu0 %166 }
 0x10b   :  { %505 = vpow2.f32 %v218_v9  ;;  %v680_v13 = vadd.f32 %v167_v12, %v665_v62  ;;  %v226_v14 = vmul.f32 1.442695, %v214_v10  ;;  %v222_v15 = vmul.f32 1.442695, %v212_v11 }
 0x10c   :  { %v179_v16 = vpop.xlane.xlu2 %178  ;;  %v173_v17 = vpop.xlane.xlu1 %172 }
 0x10d   :  { %v203_v18 = vand.u32 2147483647, %v680_v13  ;;  %v684_v19 = vadd.f32 %v179_v16, %v665_v62  ;;  %507 = vpow2.f32 %v222_v15  ;;  %v687_v20 = vadd.f32 %v173_v17, %v665_v62 }
 0x10e   :  { %509 = vpow2.f32 %v226_v14  ;;  %v195_v3 = vmax.f32 %v680_v13, 0.0 }
 0x10f   :  { %v211_v21 = vsub.f32 0.0, %v203_v18  ;;  %v207_v22 = vand.u32 2147483647, %v684_v19  ;;  %v205_v23 = vand.u32 2147483647, %v687_v20 }
 0x111   :  { %v506_v24 = vpop.eup %505  ;;  %v220_v25 = vmul.f32 1.442695, %v211_v21  ;;  %v215_v26 = vsub.f32 0.0, %v207_v22  ;;  %v213_v28 = vsub.f32 0.0, %v205_v23 }
 0x112   :  { %v234_v27 = vadd.f32 1.0, %v506_v24  ;;  %v182_v29 = vpop.xlane.xlu0 %181  ;;  %v237_v40 = vmul.f32 -0.5, %v506_v24  ;;  %v240_v53 = vand.u32 2147483647, %v506_v24 }
 0x113   :  { %511 = vpow2.f32 %v220_v25  ;;  %v508_v30 = vpop.eup %507  ;;  %v228_v31 = vmul.f32 1.442695, %v215_v26  ;;  %v692_v32 = vadd.f32 %v182_v29, %v665_v62  ;;  %v224_v35 = vmul.f32 1.442695, %v213_v28 }
 0x114   :  { %v252_v33 = vadd.f32 1.0, %v508_v30  ;;  %v694_v34 = vpop.eup %509  ;;  %513 = vlog2.f32 %v234_v27  ;;  %v185_v36 = vpop.xlane.xlu1 %184  ;;  %v255_v43 = vmul.f32 -0.5, %v508_v30  ;;  %v238_v52 = vadd.f32 1.0, %v237_v40 }
 0x115   :  { %v208_v38 = vand.u32 2147483647, %v692_v32  ;;  %v270_v41 = vadd.f32 1.0, %v694_v34  ;;  %v699_v42 = vadd.f32 %v185_v36, %v665_v62  ;;  %v273_v57 = vmul.f32 -0.5, %v694_v34 }
 0x116   :  { %515 = vlog2.f32 %v252_v33  ;;  %v256_v58 = vadd.f32 1.0, %v255_v43  ;;  %v258_v60 = vand.u32 2147483647, %v508_v30  ;;  %v239_v8 = vmul.f32 %v506_v24, %v238_v52 }
 0x117   :  { %517 = vpow2.f32 %v228_v31  ;;  %v216_v45 = vsub.f32 0.0, %v208_v38  ;;  %v209_v47 = vand.u32 2147483647, %v699_v42  ;;  %vm710_vm2 = vcmp.lt.f32.partialorder %v240_v53, 0.0004427343 }
 0x118   :  { %519 = vpow2.f32 %v224_v35  ;;  %v276_v0 = vand.u32 2147483647, %v694_v34  ;;  %v274_v12 = vadd.f32 1.0, %v273_v57  ;;  %v257_v14 = vmul.f32 %v508_v30, %v256_v58 }
 0x119   :  { %v512_v39 = vpop.eup %511  ;;  %v230_v49 = vmul.f32 1.442695, %v216_v45  ;;  %v217_v1 = vsub.f32 0.0, %v209_v47  ;;  %vm717_vm4 = vcmp.lt.f32.partialorder %v258_v60, 0.0004427343  ;;  %v198_v35 = vmax.f32 %v672_v4, 0.0 }
 0x11a   :  { %v243_v44 = vadd.f32 1.0, %v512_v39  ;;  %v246_v46 = vmul.f32 -0.5, %v512_v39  ;;  %v514_v48 = vpop.eup %513  ;;  %v249_v6 = vand.u32 2147483647, %v512_v39  ;;  %v196_v36 = vmax.f32 %v675_v5, 0.0 }
 0x11b   :  { %v236_v2 = vmul.f32 0.6931472, %v514_v48  ;;  %v232_v13 = vmul.f32 1.442695, %v217_v1  ;;  %vm730_vm6 = vcmp.lt.f32.partialorder %v276_v0, 0.0004427343  ;;  %v275_v5 = vmul.f32 %v694_v34, %v274_v12 }
 0x11c   :  { %521 = vlog2.f32 %v243_v44  ;;  %v516_v50 = vpop.eup %515  ;;  %v247_v61 = vadd.f32 1.0, %v246_v46  ;;  %vm250_vm5 = vcmp.lt.f32.partialorder %v249_v6, 0.0004427343  ;;  %v197_v40 = vmax.f32 %v687_v20, 0.0 }
 0x11d   :  { %523 = vlog2.f32 %v270_v41  ;;  %v704_v55 = vpop.eup %517  ;;  %v254_v10 = vmul.f32 0.6931472, %v516_v50  ;;  %v242_v22 = vsel %vm710_vm2, %v239_v8, %v236_v2  ;;  %v200_v57 = vmax.f32 %v692_v32, 0.0 }
 0x11e   :  { %525 = vpow2.f32 %v230_v49  ;;  %v520_v59 = vpop.eup %519  ;;  %v279_v63 = vadd.f32 1.0, %v704_v55  ;;  %v248_v18 = vmul.f32 %v512_v39, %v247_v61  ;;  %v282_v24 = vmul.f32 -0.5, %v704_v55 }
 0x11f   :  { %v261_v7 = vadd.f32 1.0, %v520_v59  ;;  %v264_v15 = vmul.f32 -0.5, %v520_v59  ;;  %v260_v25 = vsel %vm717_vm4, %v257_v14, %v254_v10  ;;  %v267_v30 = vand.u32 2147483647, %v520_v59 }
 0x120   :  { %v726_v33 = vadd.f32 %v242_v22, %v194_v56  ;;  %v735_v43 = vadd.f32 %v260_v25, %v196_v36  ;;  %v283_v46 = vadd.f32 1.0, %v282_v24  ;;  %v285_v49 = vand.u32 2147483647, %v704_v55 }
 0x121   :  { %527 = vlog2.f32 %v261_v7  ;;  %v265_v27 = vadd.f32 1.0, %v264_v15  ;;  %vm268_vm8 = vcmp.lt.f32.partialorder %v267_v30, 0.0004427343  ;;  %v199_v0 = vmax.f32 %v684_v19, 0.0 }
 0x122   :  { %v522_v11 = vpop.eup %521  ;;  %529 = vlog2.f32 %v279_v63  ;;  %v324_v48 = vperm.slane %v726_v33, %v702_v51  ;;  %v284_v63 = vmul.f32 %v704_v55, %v283_v46  ;;  %vm286_vm10 = vcmp.lt.f32.partialorder %v285_v49, 0.0004427343 }
 0x123   :  { %v524_v16 = vpop.eup %523  ;;  %v245_v17 = vmul.f32 0.6931472, %v522_v11  ;;  %531 = vpow2.f32 %v232_v13  ;;  %v266_v4 = vmul.f32 %v520_v59, %v265_v27  ;;  %v326_v59 = vperm.slane %v735_v43, %v702_v51 }
 0x124   :  { %v526_v21 = vpop.eup %525  ;;  %v272_v38 = vmul.f32 0.6931472, %v524_v16  ;;  %v201_v22 = vmax.f32 %v699_v42, 0.0  ;;  %vm473_vm4 = vcmask 0  }
 0x125   :  { %v251_v26 = vsel %vm250_vm5, %v248_v18, %v245_v17  ;;  %v288_v28 = vadd.f32 1.0, %v526_v21  ;;  %v291_v31 = vmul.f32 -0.5, %v526_v21  ;;  %v294_v50 = vand.u32 2147483647, %v526_v21 }
 0x126   :  { %v724_v29 = vadd.f32 %v251_v26, %v195_v3  ;;  %v278_v34 = vsel %vm730_vm6, %v275_v5, %v272_v38 }
 0x127   :  { %533 = vlog2.f32 %v288_v28  ;;  %v528_v37 = vpop.eup %527  ;;  %v292_v47 = vadd.f32 1.0, %v291_v31  ;;  %vm295_vm11 = vcmp.lt.f32.partialorder %v294_v50, 0.0004427343  ;;  %v310_v6 = vadd.f32 %v278_v34, %v198_v35 }
 0x128   :  { %v530_v41 = vpop.eup %529  ;;  %v325_v44 = vperm.slane %v724_v29, %v702_v51  ;;  %v263_v45 = vmul.f32 0.6931472, %v528_v37  ;;  %v585_v31 = vmov 0  }
 0x129   :  { %v532_v52 = vpop.eup %531  ;;  %v281_v53 = vmul.f32 0.6931472, %v530_v41  ;;  %v293_v2 = vmul.f32 %v526_v21, %v292_v47  ;;  %v328_v15 = vperm.slane %v310_v6, %v702_v51  ;;  %502 = vset.pattern.permute.xlu2 %v585_v31  ;;  %501 = vset.pattern.permute.xlu1 %v585_v31 }
 0x12a   :  { %v269_v20 = vsel %vm268_vm8, %v266_v4, %v263_v45  ;;  %v333_v60 = vsel %vm332_vm3, %v325_v44, %v324_v48  ;;  %v297_v61 = vadd.f32 1.0, %v532_v52  ;;  %v300_v3 = vmul.f32 -0.5, %v532_v52  ;;  %500 = vset.pattern.permute.xlu0 %v585_v31 }
 0x12b   :  { %v743_v56 = vadd.f32 %v269_v20, %v197_v40  ;;  %v287_v7 = vsel %vm286_vm10, %v284_v63, %v281_v53  ;;  %v335_v9 = vsel %vm334_vm7, %v326_v59, %v333_v60  ;;  %v303_v12 = vand.u32 2147483647, %v532_v52 }
 0x12c   :  { %535 = vlog2.f32 %v297_v61  ;;  %v301_v11 = vadd.f32 1.0, %v300_v3  ;;  %v311_v55 = vadd.f32 %v287_v7, %v199_v0 }
 0x12d   :  { %v534_v58 = vpop.eup %533  ;;  %v327_v32 = vperm.slane %v743_v56, %v702_v51  ;;  %vm304_vm14 = vcmp.lt.f32.partialorder %v303_v12, 0.0004427343 }
 0x12e   :  { %v290_v1 = vmul.f32 0.6931472, %v534_v58  ;;  %v302_v13 = vmul.f32 %v532_v52, %v301_v11  ;;  %v329_v19 = vperm.slane %v311_v55, %v702_v51 }
 0x12f   :  { %v337_v14 = vsel %vm336_vm9, %v327_v32, %v335_v9 }
 0x130   :  { %v296_v8 = vsel %vm295_vm11, %v293_v2, %v290_v1  ;;  %v339_v21 = vsel %vm338_vm12, %v328_v15, %v337_v14 }
 0x131   :  { %v756_v10 = vadd.f32 %v296_v8, %v200_v57  ;;  %v341_v25 = vsel %vm340_vm13, %v329_v19, %v339_v21 }
 0x132   :  { %v536_v16 = vpop.eup %535 }
 0x133   :  { %v330_v17 = vperm.slane %v756_v10, %v702_v51  ;;  %v299_v18 = vmul.f32 0.6931472, %v536_v16 }
 0x135   :  { %v305_v23 = vsel %vm304_vm14, %v302_v13, %v299_v18  ;;  %v343_v26 = vsel %vm342_vm15, %v330_v17, %v341_v25 }
 0x136   :  { %v313_v24 = vadd.f32 %v305_v23, %v201_v22 }
 0x138   :  { %v331_v27 = vperm.slane %v313_v24, %v702_v51 }
 0x13a   :  { %v345_v28 = vsel %vm344_vm0, %v331_v27, %v343_v26 }
 0x13b   :  { %v348_v30 = vsel %vm347_vm1, %v345_v28, -inf }
 0x13c   :  { %349 = vmax.xlane.f32.xlu2 %v348_v30 }
 0x1af   :  { %v770_v42 = vpop.xlane.xlu2 %349 }
 0x1b0   :  { %v354_v35 = vperm.slane %v770_v42, 2  ;;  %v353_v36 = vperm.slane %v770_v42, 1  ;;  %v352_v37 = vperm.slane %v770_v42, 0  ;;  %v355_v41 = vperm.slane %v770_v42, 3 }
 0x1b1   :  { %v356_v44 = vperm.slane %v770_v42, 4  ;;  %v359_v45 = vperm.slane %v770_v42, 7  ;;  %v358_v20 = vperm.slane %v770_v42, 6 }
 0x1b2   :  { %v370_v38 = vsub.f32 %v735_v43, %v354_v35  ;;  %v369_v39 = vsub.f32 %v724_v29, %v353_v36  ;;  %v368_v40 = vsub.f32 %v726_v33, %v352_v37  ;;  %v371_v47 = vsub.f32 %v743_v56, %v355_v41 }
 0x1b3   :  { %v372_v48 = vsub.f32 %v310_v6, %v356_v44  ;;  %v375_v43 = vsub.f32 %v313_v24, %v359_v45  ;;  %v357_v29 = vperm.slane %v770_v42, 5  ;;  %v374_v56 = vsub.f32 %v756_v10, %v358_v20 }
 0x1b4   :  { %v380_v4 = vmul.f32 1.442695, %v370_v38  ;;  %v378_v5 = vmul.f32 1.442695, %v369_v39  ;;  %v376_v46 = vmul.f32 1.442695, %v368_v40 }
 0x1b5   :  { %v382_v49 = vmul.f32 1.442695, %v371_v47  ;;  %v384_v33 = vmul.f32 1.442695, %v372_v48  ;;  %v390_v52 = vmul.f32 1.442695, %v375_v43  ;;  %v373_v58 = vsub.f32 %v311_v55, %v357_v29 }
 0x1b6   :  { %537 = vpow2.f32 %v380_v4  ;;  %v388_v59 = vmul.f32 1.442695, %v374_v56 }
 0x1b7   :  { %539 = vpow2.f32 %v378_v5  ;;  %v386_v34 = vmul.f32 1.442695, %v373_v58 }
 0x1b8   :  { %541 = vpow2.f32 %v376_v46 }
 0x1b9   :  { %543 = vpow2.f32 %v382_v49 }
 0x1ba   :  { %545 = vpow2.f32 %v384_v33 }
 0x1bb   :  { %547 = vpow2.f32 %v390_v52 }
 0x1bc   :  { %v538_v50 = vpop.eup %537  ;;  %549 = vpow2.f32 %v386_v34 }
 0x1bd   :  { %v540_v53 = vpop.eup %539  ;;  %407 = vperm.xlu2 %502, %v538_v50   ;;  %551 = vpow2.f32 %v388_v59 }
 0x1be   :  { %v542_v57 = vpop.eup %541  ;;  %404 = vperm.xlu1 %501, %v540_v53  }
 0x1bf   :  { %401 = vperm.xlu0 %500, %v542_v57   ;;  %v544_v60 = vpop.eup %543 }
 0x1c0   :  { %v546_v61 = vpop.eup %545 }
 0x1c1   :  { %v548_v63 = vpop.eup %547 }
 0x1c2   :  { %v550_v1 = vpop.eup %549 }
 0x1c3   :  { %v552_v2 = vpop.eup %551 }
 0x1c5   :  { %410 = vperm.xlu2 %502, %v544_v60  }
 0x1c6   :  { %413 = vperm.xlu1 %501, %v546_v61  }
 0x1c7   :  { %422 = vperm.xlu0 %500, %v548_v63  }
 0x1cd   :  { %416 = vperm.xlu2 %502, %v550_v1  }
 0x1ce   :  { %419 = vperm.xlu1 %501, %v552_v2  }
 0x1f6   :  { %95 = vadd.xlane.f32.xlu2 %v656_v54 }
 0x217   :  { %v408_v3 = vpop.permute.xlu2 %407 }
 0x218   :  { %v426_v11 = vperm.slane %v408_v3, %v702_v51 }
 0x21f   :  { %v411_v7 = vpop.permute.xlu2 %410 }
 0x220   :  { %v427_v14 = vperm.slane %v411_v7, %v702_v51 }
 0x227   :  { %v417_v54 = vpop.permute.xlu2 %416 }
 0x228   :  { %v429_v18 = vperm.slane %v417_v54, %v702_v51 }
 0x230   :  { %v405_v32 = vpop.permute.xlu1 %404 }
 0x231   :  { %v402_v6 = vpop.permute.xlu0 %401  ;;  %v425_v8 = vperm.slane %v405_v32, %v702_v51 }
 0x232   :  { %v424_v9 = vperm.slane %v402_v6, %v702_v51 }
 0x234   :  { %v432_v0 = vsel %vm332_vm3, %v425_v8, %v424_v9  ;;  %vm446_vm3 = vcmask 7168  }
 0x235   :  { %v433_v55 = vsel %vm334_vm7, %v426_v11, %v432_v0 }
 0x236   :  { %v434_v15 = vsel %vm336_vm9, %v427_v14, %v433_v55 }
 0x238   :  { %v414_v10 = vpop.permute.xlu1 %413 }
 0x239   :  { %v428_v12 = vperm.slane %v414_v10, %v702_v51  ;;  %v423_v17 = vpop.permute.xlu0 %422 }
 0x23a   :  { %v431_v19 = vperm.slane %v423_v17, %v702_v51 }
 0x23b   :  { %v435_v16 = vsel %vm338_vm12, %v428_v12, %v434_v15 }
 0x23c   :  { %v436_v22 = vsel %vm340_vm13, %v429_v18, %v435_v16 }
 0x240   :  { %v420_v13 = vpop.permute.xlu1 %419 }
 0x241   :  { %v430_v21 = vperm.slane %v420_v13, %v702_v51 }
 0x243   :  { %v437_v23 = vsel %vm342_vm15, %v430_v21, %v436_v22 }
 0x244   :  { %v438_v24 = vsel %vm344_vm0, %v431_v19, %v437_v23 }
 0x245   :  { %v440_v25 = vsel %vm347_vm1, %v438_v24, 0.0 }
 0x246   :  { %441 = vadd.xlane.f32.xlu1 %v440_v25 }
 0x269   :  { %v96_v26 = vpop.xlane.xlu2 %95 }
 0x26a   :  { %v98_v27 = vadd.f32 %v665_v62, %v96_v26 }
 0x26c   :  { %v100_v28 = vand.u32 2147483647, %v98_v27  ;;  %v99_v44 = vmax.f32 %v98_v27, 0.0 }
 0x26e   :  { %v101_v30 = vsub.f32 0.0, %v100_v28 }
 0x270   :  { %v102_v31 = vmul.f32 1.442695, %v101_v30 }
 0x272   :  { %553 = vpow2.f32 %v102_v31 }
 0x278   :  { %v554_v35 = vpop.eup %553 }
 0x279   :  { %v104_v36 = vadd.f32 1.0, %v554_v35  ;;  %v107_v37 = vmul.f32 -0.5, %v554_v35  ;;  %v110_v38 = vand.u32 2147483647, %v554_v35 }
 0x27b   :  { %555 = vlog2.f32 %v104_v36  ;;  %v108_v51 = vadd.f32 1.0, %v107_v37  ;;  %vm111_vm2 = vcmp.lt.f32.partialorder %v110_v38, 0.0004427343 }
 0x27d   :  { %v109_v41 = vmul.f32 %v554_v35, %v108_v51 }
 0x281   :  { %v556_v39 = vpop.eup %555 }
 0x282   :  { %v106_v40 = vmul.f32 0.6931472, %v556_v39 }
 0x284   :  { %v112_v45 = vsel %vm111_vm2, %v109_v41, %v106_v40 }
 0x285   :  { %v113_v4 = vadd.f32 %v112_v45, %v99_v44 }
 0x287   :  { %v447_v5 = vsel %vm446_vm3, %v113_v4, 0.0 }
 0x288   :  { %448 = vadd.xlane.f32.xlu0 %v447_v5 }
 0x2b9   :  { %v442_v62 = vpop.xlane.xlu1 %441 }
 0x2ba   :  { %557 = vlog2.f32 %v442_v62 }
 0x2c0   :  { %v558_v46 = vpop.eup %557 }
 0x2c1   :  { %v444_v47 = vmul.f32 0.6931472, %v558_v46 }
 0x2c3   :  { %v445_v48 = vadd.f32 %v444_v47, %v770_v42 }
 0x2c5   :  { %v459_v43 = vsel %vm446_vm3, %v445_v48, 0.0 }
 0x2c6   :  { %460 = vadd.xlane.f32.xlu2 %v459_v43 }
 0x2fb   :  { %v449_v49 = vpop.xlane.xlu0 %448 }
 0x2fc   :  { %v450_v29 = vrot.slane %v449_v49, 4 }
 0x2fe   :  { %v451_v33 = vadd.f32 %v450_v29, %v449_v49 }
 0x300   :  { %v452_v20 = vrot.slane %v451_v33, 2 }
 0x302   :  { %v453_v50 = vadd.f32 %v452_v20, %v451_v33 }
 0x304   :  { %v454_v52 = vrot.slane %v453_v50, 1 }
 0x306   :  { %v455_v53 = vadd.f32 %v454_v52, %v453_v50 }
 0x308   :  { %494 = vpush %v455_v53 }
 0x339   :  { %v461_v57 = vpop.xlane.xlu2 %460  ;;  %s495_s5 = spop %494 }
 0x33a   :  { %v462_v58 = vrot.slane %v461_v57, 4  ;;  %v457_v42 = vstv %s495_s5 }
 0x33b   :  { %v458_v2 = vmul.f32 0.125, %v457_v42 }
 0x33c   :  { %v463_v56 = vadd.f32 %v462_v58, %v461_v57 }
 0x33e   :  { %v464_v34 = vrot.slane %v463_v56, 2 }
 0x340   :  { %v465_v59 = vadd.f32 %v464_v34, %v463_v56 }
 0x342   :  { %v466_v60 = vrot.slane %v465_v59, 1 }
 0x344   :  { %v467_v61 = vadd.f32 %v466_v60, %v465_v59 }
 0x346   :  { %496 = vpush %v467_v61 }
 0x377   :  { %s497_s6 = spop %496 }
 0x378   :  { %v469_v63 = vstv %s497_s6 }
 0x379   :  { %v470_v1 = vmul.f32 0.125, %v469_v63 }
 0x37b   :  { %v493_v3 = vadd.f32 -2.0794415, %v470_v1 }
 0x37d   :  { %v472_v32 = vsub.f32 %v458_v2, %v493_v3 }
 0x37f   :  { %474 = vst.msk [vmem:[#allocation3] sm:$0x1] %vm473_vm4, %v472_v32 }
 0x380   :  { %485 = dma.vmem_to_hbm [thread:$0]  %s481_s15, 16, %s483_s18, [#allocation4]  }
 0x381   :  { %583 = dma.done.wait [#allocation4], 16  }
 0x382   :  { %584 = vsyncadd [#allocation4], 4294967280 }
 0x383   :  { %490 = vsyncpa [#allocation4], 1 }

</bundles_post_ra>
